<compile_context>
chip_gen: v7x
topology: tpu7x:2x2x1
jax: 0.10.0
libtpu: 0.0.40
codegen_flags: <defaults>
</compile_context>

<pallas_src>
from functools import partial

import jax
import jax.numpy as jnp
from jax.experimental import pallas as pl
from jax.experimental.pallas import tpu as pltpu


# -----------------------------------------------------------------------------
# Pallas kernel: full SelfAttention forward for one batch element.
# -----------------------------------------------------------------------------
def self_attention_kernel(
    x_ref,        # (1, L, E)
    wqkv_ref,     # (E, 3E)  folded (outer Linear ∘ MHA in-proj), pre-transposed
    bqkv_ref,     # (1, 3E)  folded bias
    wo_ref,       # (E, E)   MHA out_proj weight, pre-transposed
    bo_ref,       # (1, E)   MHA out_proj bias
    o_ref,        # (1, L, E)
    *,
    num_heads: int,
):
    x = x_ref[0]                   # (L, E)
    L, E = x.shape
    hd = E // num_heads
    scale = 1.0 / (hd ** 0.5)

    # Fused Q/K/V projection: one lane-dense (L, E) @ (E, 3E) matmul on the MXU.
    qkv = (
        jnp.dot(x, wqkv_ref[...], preferred_element_type=jnp.float32)
        + bqkv_ref[...]
    )                                               # (L, 3E) f32
    q = qkv[:, :E]
    k = qkv[:, E:2 * E]
    v = qkv[:, 2 * E:]

    # (L, E) -> (H, L, hd): batched per-head attention via einsum (no per-head loop).
    qh = q.reshape(L, num_heads, hd).transpose(1, 0, 2) * scale
    kh = k.reshape(L, num_heads, hd).transpose(1, 0, 2)
    vh = v.reshape(L, num_heads, hd).transpose(1, 0, 2)

    s = jnp.einsum("hld,hmd->hlm", qh, kh,
                   preferred_element_type=jnp.float32)          # (H, L, L)
    m = jnp.max(s, axis=-1, keepdims=True)
    p = jnp.exp(s - m)
    denom = jnp.sum(p, axis=-1, keepdims=True)
    attn = p * pl.reciprocal(denom, approx=True)                # EUP reciprocal
    ctx = jnp.einsum("hlm,hmd->hld", attn, vh,
                     preferred_element_type=jnp.float32)        # (H, L, hd)
    ctx = ctx.transpose(1, 0, 2).reshape(L, E)                  # (L, E)

    # MHA output projection + residual.
    att = (
        jnp.dot(ctx, wo_ref[...], preferred_element_type=jnp.float32)
        + bo_ref[...]
    )
    o_ref[0] = (att + x).astype(o_ref.dtype)


# -----------------------------------------------------------------------------
# Host-side weight folding / pre-transposition (done once, outside the kernel).
# -----------------------------------------------------------------------------
def fold_params(params):
    """Compose outer Linear with the MHA in-proj and pre-transpose everything.

    y = (x @ Wout.T + bout) @ Win.T + bin
      = x @ (Wout.T @ Win.T) + (bout @ Win.T + bin)
    """
    def fold(w_out, b_out, w_in, b_in):
        w_eff_t = w_out.T @ w_in.T          # (E, E), already (in, out)
        b_eff = b_out @ w_in.T + b_in       # (1, E)
        return w_eff_t, b_eff

    wq_t, bq = fold(params["wq_w"], params["wq_b"], params["iq_w"], params["iq_b"])
    wk_t, bk = fold(params["wk_w"], params["wk_b"], params["ik_w"], params["ik_b"])
    wv_t, bv = fold(params["wv_w"], params["wv_b"], params["iv_w"], params["iv_b"])

    w_qkv = jnp.concatenate([wq_t, wk_t, wv_t], axis=1)   # (E, 3E)
    b_qkv = jnp.concatenate([bq, bk, bv], axis=1)         # (1, 3E)
    w_o_t = params["o_w"].T                               # (E, E), (in, out)
    b_o = params["o_b"]                                   # (1, E)
    return w_qkv, b_qkv, w_o_t, b_o


# -----------------------------------------------------------------------------
# Wrapper
# -----------------------------------------------------------------------------
def self_attention_pallas(x, params, num_heads):
    """x: (L, N, E) float32. Returns (L, N, E)."""
    L, N, E = x.shape
    H = num_heads

    w_qkv, b_qkv, w_o_t, b_o = fold_params(params)

    # Batch-major copy for a lane/sublane-friendly (1, L, E) grid block.
    # (At production sizes feed batch-major activations to skip this transpose.)
    x_b = jnp.transpose(x, (1, 0, 2))  # (N, L, E)

    x_spec = pl.BlockSpec((1, L, E), lambda b: (b, 0, 0))
    wqkv_spec = pl.BlockSpec((E, 3 * E), lambda b: (0, 0))
    bqkv_spec = pl.BlockSpec((1, 3 * E), lambda b: (0, 0))
    wo_spec = pl.BlockSpec((E, E), lambda b: (0, 0))
    bo_spec = pl.BlockSpec((1, E), lambda b: (0, 0))

    # Advisory cost estimate for the XLA scheduler.
    flops = N * (2 * L * E * 3 * E          # fused QKV projection
                 + 4 * L * L * E            # scores + attn@V
                 + 2 * L * E * E)           # out projection
    transcendentals = N * H * L * L + N * H * L        # exp + reciprocal
    bytes_accessed = (E * 3 * E + 3 * E + E * E + E) * 4 + 2 * N * L * E * 4

    kernel = partial(self_attention_kernel, num_heads=num_heads)

    out = pl.pallas_call(
        kernel,
        out_shape=jax.ShapeDtypeStruct((N, L, E), x.dtype),
        grid=(N,),
        in_specs=[x_spec, wqkv_spec, bqkv_spec, wo_spec, bo_spec],
        out_specs=x_spec,
        compiler_params=pltpu.CompilerParams(
            dimension_semantics=("parallel",),
        ),
        cost_estimate=pl.CostEstimate(
            flops=flops,
            transcendentals=transcendentals,
            bytes_accessed=bytes_accessed,
        ),
    )(x_b, w_qkv, b_qkv, w_o_t, b_o)

    return jnp.transpose(out, (1, 0, 2))  # back to (L, N, E)


# -----------------------------------------------------------------------------
# Pure-JAX reference (mirrors PyTorch semantics, unfolded weights).
# -----------------------------------------------------------------------------
def self_attention_ref(x, params, num_heads):
    L, N, E = x.shape
    hd = E // num_heads
    scale = 1.0 / (hd ** 0.5)

    def lin(inp, w, b):
        return inp @ w.T + b[0]

    q = lin(lin(x, params["wq_w"], params["wq_b"]), params["iq_w"], params["iq_b"])
    k = lin(lin(x, params["wk_w"], params["wk_b"]), params["ik_w"], params["ik_b"])
    v = lin(lin(x, params["wv_w"], params["wv_b"]), params["iv_w"], params["iv_b"])

    def to_heads(t):
        return jnp.transpose(t.reshape(L, N, num_heads, hd), (1, 2, 0, 3))

    qh, kh, vh = to_heads(q) * scale, to_heads(k), to_heads(v)
    s = jnp.einsum("nhld,nhmd->nhlm", qh, kh)
    attn = jax.nn.softmax(s, axis=-1)
    ctx = jnp.einsum("nhlm,nhmd->nhld", attn, vh)        # (N, H, L, hd)
    ctx = jnp.transpose(ctx, (2, 0, 1, 3)).reshape(L, N, E)
    att = lin(ctx, params["o_w"], params["o_b"])
    return att + x


# -----------------------------------------------------------------------------
# Deterministic parameter init + run
# -----------------------------------------------------------------------------
def make_params(key, dim):
    names_w = ["wq_w", "wk_w", "wv_w", "iq_w", "ik_w", "iv_w", "o_w"]
    names_b = ["wq_b", "wk_b", "wv_b", "iq_b", "ik_b", "iv_b", "o_b"]
    keys = jax.random.split(key, len(names_w) + len(names_b))
    params = {}
    for i, n in enumerate(names_w):
        params[n] = jax.random.normal(keys[i], (dim, dim), jnp.float32) * 0.05
    for i, n in enumerate(names_b):
        params[n] = (
            jax.random.normal(keys[len(names_w) + i], (1, dim), jnp.float32) * 0.02
        )
    return params


if __name__ == "__main__":
    SEQ, BATCH, DIM, HEADS = 8, 2, 32, 4

    key = jax.random.PRNGKey(0)
    kx, kp = jax.random.split(key)
    x = jax.random.normal(kx, (SEQ, BATCH, DIM), jnp.float32)  # layout: (L, N, E)
    params = make_params(kp, DIM)

    out = self_attention_pallas(x, params, HEADS)
    out = jax.block_until_ready(out)

    ref = self_attention_ref(x, params, HEADS)
    assert out.shape == (SEQ, BATCH, DIM)
    # Tolerance loosened slightly vs. pure-f32: weight folding reorders the
    # projection math and the softmax denominator uses the EUP approx reciprocal.
    assert jnp.allclose(out, ref, atol=2e-3, rtol=2e-3), "mismatch vs reference"

    print("KERNEL_OK")
</pallas_src>

<mosaic_0001>
module attributes {stable_mosaic.version = 11 : i64} {
  func.func @self_attention_kernel(%arg0: i32, %arg1: memref<1x8x32xf32, #tpu.memory_space<vmem>>, %arg2: memref<32x96xf32, #tpu.memory_space<vmem>>, %arg3: memref<1x96xf32, #tpu.memory_space<vmem>>, %arg4: memref<32x32xf32, #tpu.memory_space<vmem>>, %arg5: memref<1x32xf32, #tpu.memory_space<vmem>>, %arg6: memref<1x8x32xf32, #tpu.memory_space<vmem>>) attributes {dimension_semantics = [#tpu.dimension_semantics<parallel>], iteration_bounds = array<i64: 2>, scalar_prefetch = 0 : i64, scratch_operands = 0 : i64, tpu.core_type = #tpu.core_type<tc>, window_params = [{transform_indices = @transform_0, window_bounds = array<i64: 1, 8, 32>}, {pipeline_mode = #tpu.pipeline_mode<synchronous>, transform_indices = @transform_1, window_bounds = array<i64: 32, 96>}, {pipeline_mode = #tpu.pipeline_mode<synchronous>, transform_indices = @transform_2, window_bounds = array<i64: 1, 96>}, {pipeline_mode = #tpu.pipeline_mode<synchronous>, transform_indices = @transform_3, window_bounds = array<i64: 32, 32>}, {pipeline_mode = #tpu.pipeline_mode<synchronous>, transform_indices = @transform_4, window_bounds = array<i64: 1, 32>}, {transform_indices = @transform_5, window_bounds = array<i64: 1, 8, 32>}]} {
    %c0 = arith.constant 0 : index
    %c0_0 = arith.constant 0 : index
    %c0_1 = arith.constant 0 : index
    %0 = vector.load %arg1[%c0, %c0_0, %c0_1] : memref<1x8x32xf32, #tpu.memory_space<vmem>>, vector<1x8x32xf32>
    %1 = vector.shape_cast %0 : vector<1x8x32xf32> to vector<8x32xf32>
    %c0_2 = arith.constant 0 : index
    %c0_3 = arith.constant 0 : index
    %2 = vector.load %arg2[%c0_2, %c0_3] : memref<32x96xf32, #tpu.memory_space<vmem>>, vector<32x96xf32>
    %cst = arith.constant dense<0.000000e+00> : vector<8x96xf32>
    %3 = tpu.matmul %1, %2, %cst {dimension_numbers = #tpu.dot_dimension_numbers<[1], [0], [0], [1], [0, 0, 1, 1], [], []>} : vector<8x32xf32>, vector<32x96xf32>, vector<8x96xf32> -> vector<8x96xf32>
    %c0_4 = arith.constant 0 : index
    %c0_5 = arith.constant 0 : index
    %4 = vector.load %arg3[%c0_4, %c0_5] : memref<1x96xf32, #tpu.memory_space<vmem>>, vector<1x96xf32>
    %5 = vector.broadcast %4 : vector<1x96xf32> to vector<8x96xf32>
    %6 = arith.addf %3, %5 : vector<8x96xf32>
    %7 = vector.extract_strided_slice %6 {offsets = [0, 0], sizes = [8, 32], strides = [1, 1]} : vector<8x96xf32> to vector<8x32xf32>
    %8 = vector.extract_strided_slice %6 {offsets = [0, 32], sizes = [8, 32], strides = [1, 1]} : vector<8x96xf32> to vector<8x32xf32>
    %9 = vector.extract_strided_slice %6 {offsets = [0, 64], sizes = [8, 32], strides = [1, 1]} : vector<8x96xf32> to vector<8x32xf32>
    %10 = vector.shape_cast %7 : vector<8x32xf32> to vector<8x4x8xf32>
    %11 = tpu.transpose %10, [1, 0, 2] : vector<8x4x8xf32> -> vector<4x8x8xf32>
    %cst_6 = arith.constant 0.353553385 : f32
    %12 = vector.broadcast %cst_6 : f32 to vector<4x8x8xf32>
    %13 = arith.mulf %11, %12 : vector<4x8x8xf32>
    %14 = vector.shape_cast %8 : vector<8x32xf32> to vector<8x4x8xf32>
    %15 = tpu.transpose %14, [1, 0, 2] : vector<8x4x8xf32> -> vector<4x8x8xf32>
    %16 = vector.shape_cast %9 : vector<8x32xf32> to vector<8x4x8xf32>
    %17 = tpu.transpose %16, [1, 0, 2] : vector<8x4x8xf32> -> vector<4x8x8xf32>
    "tpu.trace_start"() <{level = 10 : i32, message = "hld,hmd->hlm"}> : () -> ()
    %cst_7 = arith.constant dense<0.000000e+00> : vector<4x8x8xf32>
    %18 = tpu.matmul %13, %15, %cst_7 {dimension_numbers = #tpu.dot_dimension_numbers<[2], [2], [1], [1], [0, 0, 0, 1, 1, 1], [0], [0]>} : vector<4x8x8xf32>, vector<4x8x8xf32>, vector<4x8x8xf32> -> vector<4x8x8xf32>
    "tpu.trace_stop"() : () -> ()
    %cst_8 = arith.constant dense<0xFF800000> : vector<4x8xf32>
    %19 = vector.multi_reduction <maximumf>, %18, %cst_8 [2] : vector<4x8x8xf32> to vector<4x8xf32>
    %20 = vector.shape_cast %19 : vector<4x8xf32> to vector<4x8x1xf32>
    %21 = vector.broadcast %20 : vector<4x8x1xf32> to vector<4x8x8xf32>
    %22 = arith.subf %18, %21 : vector<4x8x8xf32>
    %23 = math.exp %22 : vector<4x8x8xf32>
    %cst_9 = arith.constant dense<0.000000e+00> : vector<4x8xf32>
    %24 = vector.multi_reduction <add>, %23, %cst_9 [2] : vector<4x8x8xf32> to vector<4x8xf32>
    %25 = vector.shape_cast %24 : vector<4x8xf32> to vector<4x8x1xf32>
    %26 = tpu.reciprocal %25 {approx = true} : vector<4x8x1xf32> -> vector<4x8x1xf32>
    %27 = vector.broadcast %26 : vector<4x8x1xf32> to vector<4x8x8xf32>
    %28 = arith.mulf %23, %27 : vector<4x8x8xf32>
    "tpu.trace_start"() <{level = 10 : i32, message = "hlm,hmd->hld"}> : () -> ()
    %cst_10 = arith.constant dense<0.000000e+00> : vector<4x8x8xf32>
    %29 = tpu.matmul %28, %17, %cst_10 {dimension_numbers = #tpu.dot_dimension_numbers<[2], [1], [1], [2], [0, 0, 0, 1, 1, 2], [0], [0]>} : vector<4x8x8xf32>, vector<4x8x8xf32>, vector<4x8x8xf32> -> vector<4x8x8xf32>
    "tpu.trace_stop"() : () -> ()
    %30 = tpu.transpose %29, [1, 0, 2] : vector<4x8x8xf32> -> vector<8x4x8xf32>
    %31 = vector.shape_cast %30 : vector<8x4x8xf32> to vector<8x32xf32>
    %c0_11 = arith.constant 0 : index
    %c0_12 = arith.constant 0 : index
    %32 = vector.load %arg4[%c0_11, %c0_12] : memref<32x32xf32, #tpu.memory_space<vmem>>, vector<32x32xf32>
    %cst_13 = arith.constant dense<0.000000e+00> : vector<8x32xf32>
    %33 = tpu.matmul %31, %32, %cst_13 {dimension_numbers = #tpu.dot_dimension_numbers<[1], [0], [0], [1], [0, 0, 1, 1], [], []>} : vector<8x32xf32>, vector<32x32xf32>, vector<8x32xf32> -> vector<8x32xf32>
    %c0_14 = arith.constant 0 : index
    %c0_15 = arith.constant 0 : index
    %34 = vector.load %arg5[%c0_14, %c0_15] : memref<1x32xf32, #tpu.memory_space<vmem>>, vector<1x32xf32>
    %35 = vector.broadcast %34 : vector<1x32xf32> to vector<8x32xf32>
    %36 = arith.addf %33, %35 : vector<8x32xf32>
    %37 = arith.addf %36, %1 : vector<8x32xf32>
    %c0_16 = arith.constant 0 : index
    %c0_17 = arith.constant 0 : index
    %c0_18 = arith.constant 0 : index
    %38 = vector.load %arg6[%c0_16, %c0_17, %c0_18] : memref<1x8x32xf32, #tpu.memory_space<vmem>>, vector<1x8x32xf32>
    %39 = vector.shape_cast %38 : vector<1x8x32xf32> to vector<8x32xf32>
    %40 = vector.shape_cast %37 : vector<8x32xf32> to vector<1x8x32xf32>
    tpu.vector_store %arg6[%c0_16, %c0_17, %c0_18], %40 {strides = array<i32>} : memref<1x8x32xf32, #tpu.memory_space<vmem>>, vector<1x8x32xf32>,
    return
  }
  func.func @transform_0(%arg0: i32) -> (i32, i32, i32) {
    %c0_i32 = arith.constant 0 : i32
    %c0_i32_0 = arith.constant 0 : i32
    %c0_i32_1 = arith.constant 0 : i32
    return %arg0, %c0_i32, %c0_i32_0 : i32, i32, i32
  }
  func.func @transform_1(%arg0: i32) -> (i32, i32) {
    %c0_i32 = arith.constant 0 : i32
    %c0_i32_0 = arith.constant 0 : i32
    %c0_i32_1 = arith.constant 0 : i32
    return %c0_i32, %c0_i32_0 : i32, i32
  }
  func.func @transform_2(%arg0: i32) -> (i32, i32) {
    %c0_i32 = arith.constant 0 : i32
    %c0_i32_0 = arith.constant 0 : i32
    %c0_i32_1 = arith.constant 0 : i32
    return %c0_i32, %c0_i32_0 : i32, i32
  }
  func.func @transform_3(%arg0: i32) -> (i32, i32) {
    %c0_i32 = arith.constant 0 : i32
    %c0_i32_0 = arith.constant 0 : i32
    %c0_i32_1 = arith.constant 0 : i32
    return %c0_i32, %c0_i32_0 : i32, i32
  }
  func.func @transform_4(%arg0: i32) -> (i32, i32) {
    %c0_i32 = arith.constant 0 : i32
    %c0_i32_0 = arith.constant 0 : i32
    %c0_i32_1 = arith.constant 0 : i32
    return %c0_i32, %c0_i32_0 : i32, i32
  }
  func.func @transform_5(%arg0: i32) -> (i32, i32, i32) {
    %c0_i32 = arith.constant 0 : i32
    %c0_i32_0 = arith.constant 0 : i32
    %c0_i32_1 = arith.constant 0 : i32
    return %arg0, %c0_i32, %c0_i32_0 : i32, i32, i32
  }
}

</mosaic_0001>

<bundles_post_ra>
// kernel: tpu_custom_call.1
= control target key start
LH: loop header
LB: loop body
LE: loop exit
PB: predicated region body
PF: predicated region fallthrough
CT: control target
= control target key end

     0   :  { %10 = vsyncpa [#allocation3], 0  ;;  %s2639_s0 = inlined_call_operand.hbm [shape: f32[2,8,32], index: 0, kind: input, shape index: {}]   ;;  %s2640_s1 = inlined_call_operand.hbm [shape: f32[32,96], index: 1, kind: input, shape index: {}]   ;;  %s2641_s2 = inlined_call_operand.vmem [shape: f32[1,96], index: 2, kind: input, shape index: {}]   ;;  %s2642_s3 = inlined_call_operand.hbm [shape: f32[32,32], index: 3, kind: input, shape index: {}]   ;;  %s2643_s4 = inlined_call_operand.vmem [shape: f32[1,32], index: 4, kind: input, shape index: {}]   ;;  %s2644_s5 = inlined_call_operand.hbm [shape: f32[2,8,32], index: 5, kind: output, shape index: {}]  }
   0x1   :  { %12 = vsyncpa [#allocation3 + $0x1], 0 }
   0x2   :  { %13 = vsyncpa [#allocation6], 0 }
   0x3   :  { %14 = vsyncpa [#allocation4], 0 }
   0x4   :  { %16 = vsyncpa [#allocation4 + $0x1], 0  ;;  %s2229_s18 = smov 0   ;;  %s2231_s19 = smov 0  }
   0x5   :  { %s2233_s20 = smov 0   ;;  %s2235_s21 = smov 0  }
   0x6 LB: > { %s2250_s22 = sadd.s32 4294967295, %s2178_s21   ;;  %s1784_s23 = sadd.s32 4294967294, %s2178_s21   ;;  %s2178_s21 = sphi %s2235_s21, %s2664_s21   ;;  %s2174_s20 = sphi %s2233_s20, %s2663_s20   ;;  %s2170_s19 = sphi %s2231_s19, %s2662_s19   ;;  %s2166_s18 = sphi %s2229_s18, %s2661_s18  }
   0x7   : > { %p42_p0 = scmp.ne.s32.totalorder %s2170_s19, %s2166_s18  ;;  %p2645_p1 = scmp.eq.s32.totalorder %s2250_s22, 0 }
   0x8   : > { %p156_p3 = scmp.eq.s32.totalorder %s1784_s23, 1  ;;  %p1785_p5 = scmp.ge.s32.totalorder %s2178_s21, 1 }
   0x9   : > { %p2259_p4 = por %p2645_p1, %p42_p0  ;;  %p163_p7 = scmp.lt.s32.totalorder %s2178_s21, 3 }
   0xa   : > { %p2264_p6 = por %p156_p3, %p42_p0  ;;  %s2180_s27 = smov [#allocation5]  }
   0xb   : > { %s2648_s24 = scalar_select %p2259_p4, 1, 0 }
   0xc   : > { %s2649_s25 = scalar_select %p2264_p6, 1, 0 }
   0xd   : > { %p2269_p8 = pnand %p1785_p5, %p163_p7  ;;  %s175_s28 = sshll.u32 %s2180_s27, 4  ;;  %s2273_s28 = int_to_ptr.vmem [resolvable:$true] %s175_s28 }
   0xe   : > { %s2181_s30 = smov [#allocation7]   ;;  %s2022_s9 = scalar_lea.hbm %s2640_s1, 512 }
   0xf   : > { %p1936_p9 = pneg %p2269_p8  ;;  %s191_s6 = sshll.u32 %s2181_s30, 4  ;;  %s2284_s6 = int_to_ptr.vmem [resolvable:$true] %s191_s6 }
  0x10   : > { %p2023_p12 = scmp.ne.s32.totalorder %s2640_s1, %s2022_s9  ;;  %p2029_p5 = scmp.lt.u32.totalorder %s2022_s9, %s2640_s1 }
  0x11   : > { %p2280_p11 = pnand %p1936_p9, %p2645_p1 }
  0x13   : > { %p2024_p13 = pneg %p2280_p11 }
  0x15   : > { %p2025_p0 = pnand %p2024_p13, %p2023_p12 }
  0x17   : > { %p2026_p3 = pneg %p2025_p0 }
  0x19   : > { %p2031_p7 = pnand %p2029_p5, %p2026_p3 }
  0x1b   : > { %2034 = shalt.err (!%p2031_p7)
}
  0x1c   : > { %s2035_s14 = scalar_lea.vmem %s2273_s28, 512  ;;  %p2043_p2 = scmp.lt.s32.totalorder %s2273_s28, %s2273_s28 }
  0x1d   : > { %p2036_p9 = scmp.ne.s32.totalorder %s2273_s28, %s2035_s14  ;;  %p2044_p12 = scmp.lt.s32.totalorder %s2035_s14, %s2035_s14 }
  0x1f   : > { %p2038_p10 = pnand %p2036_p9, %p2024_p13  ;;  %p2045_p0 = por %p2044_p12, %p2043_p2 }
  0x21   : > { %p2039_p1 = pneg %p2038_p10 }
  0x23   : > { %p2046_p6 = pnand %p2045_p0, %p2039_p1 }
  0x25   : > { %2049 = shalt.err (!%p2046_p6)
}
  0x26   : > { %s2182_s15 = smov 128   ;;  %s2183_s16 = smov 8  }
  0x27   : > { %1939 = dma.hbm_to_vmem [thread:$0]  (!%p2280_p11), %s2640_s1, 512, %s2273_s28, [#allocation6], %s2182_s15, %s2182_s15, %s2183_s16  }
  0x28   : > { %s2050_s7 = scalar_lea.hbm %s2642_s3, 512 }
  0x29   : > { %p2051_p2 = scmp.ne.s32.totalorder %s2642_s3, %s2050_s7  ;;  %p2057_p10 = scmp.lt.u32.totalorder %s2050_s7, %s2642_s3 }
  0x2b   : > { %p2053_p1 = pnand %p2051_p2, %p2024_p13 }
  0x2d   : > { %p2054_p6 = pneg %p2053_p1 }
  0x2f   : > { %p2059_p3 = pnand %p2057_p10, %p2054_p6 }
  0x31   : > { %2062 = shalt.err (!%p2059_p3)
}
  0x32   : > { %s2063_s28 = scalar_lea.vmem %s2284_s6, 512  ;;  %p2071_p12 = scmp.lt.s32.totalorder %s2284_s6, %s2284_s6 }
  0x33   : > { %p2064_p5 = scmp.ne.s32.totalorder %s2284_s6, %s2063_s28  ;;  %p2072_p0 = scmp.lt.s32.totalorder %s2063_s28, %s2063_s28 }
  0x35   : > { %p2066_p7 = pnand %p2064_p5, %p2024_p13  ;;  %p2073_p2 = por %p2072_p0, %p2071_p12 }
  0x37   : > { %p2067_p9 = pneg %p2066_p7 }
  0x39   : > { %p2074_p1 = pnand %p2073_p2, %p2067_p9 }
  0x3b   : > { %2077 = shalt.err (!%p2074_p1)
}
  0x3c   : > { %1942 = dma.hbm_to_vmem [thread:$0]  (!%p2280_p11), %s2642_s3, 512, %s2284_s6, [#allocation6], %s2182_s15, %s2182_s15, %s2183_s16  }
  0x3d   : > { %s2339_s14 = sadd.s32 1, %s2178_s21   ;;  %s29_s29 = sadd.s32 1, %s2174_s20 }
  0x3e   : > { %s26_s17 = ssub.s32 %s2178_s21, %s2339_s14  ;;  %p36_p13 = scmp.ne.s32.totalorder %s2174_s20, %s2170_s19 }
  0x3f   : > { %p27_p6 = scmp.eq.s32.totalorder %s26_s17, 0  ;;  %p37_p10 = scmp.eq.s32.totalorder %s2178_s21, 0 }
  0x40   : > { %p2652_p3 = scmp.eq.s32.totalorder %s2250_s22, 1  ;;  %p1953_p7 = scmp.lt.s32.totalorder %s2178_s21, 2 }
  0x41   : > { %s2355_s27 = scalar_select %p27_p6, %s2174_s20, %s29_s29  }
  0x42   : > { %p2349_p5 = por %p2652_p3, %p36_p13  ;;  %p38_p9 = por %p37_p10, %p36_p13 }
  0x43   : > { %s208_s30 = sand.u32 1, %s2174_s20   ;;  %s1790_s6 = sshll.u32 %s2178_s21, 7 }
  0x44   : > { %s2653_s23 = scalar_select %p2349_p5, 1, 0 }
  0x45   : > { %s1789_s7 = sshll.u32 %s208_s30, 3  ;;  %s2362_s8 = scalar_lea.hbm %s2639_s0, %s1790_s6 }
  0x46   : > { %s212_s9 = scalar_lea.vmem [#allocation2], %s1789_s7  ;;  %p2366_p11 = pnand %p1953_p7, %p38_p9 }
  0x47   : > { %s219_s10 = sshll.u32 %s212_s9, 4  ;;  %s209_s28 = scalar_lea.sflag [#allocation3], %s208_s30  ;;  %s2364_s10 = int_to_ptr.vmem [resolvable:$true] %s219_s10 }
  0x48   : > { %s2078_s12 = scalar_lea.hbm %s2362_s8, 128  ;;  %p2080_p0 = pneg %p2366_p11 }
  0x49   : > { %p2079_p12 = scmp.ne.s32.totalorder %s2362_s8, %s2078_s12  ;;  %s2083_s17 = scalar_lea.hbm %s2639_s0, 256 }
  0x4a   : > { %p2084_p13 = scmp.lt.u32.totalorder %s2362_s8, %s2639_s0  ;;  %p2085_p6 = scmp.lt.u32.totalorder %s2083_s17, %s2078_s12 }
  0x4b   : > { %p2081_p2 = pnand %p2080_p0, %p2079_p12  ;;  %p2087_p3 = scmp.lt.u32.totalorder %s2078_s12, %s2362_s8 }
  0x4c   : > { %p2086_p10 = por %p2085_p6, %p2084_p13 }
  0x4d   : > { %p2082_p1 = pneg %p2081_p2 }
  0x4e   : > { %p2088_p7 = por %p2087_p3, %p2086_p10 }
  0x50   : > { %p2089_p9 = pnand %p2088_p7, %p2082_p1 }
  0x52   : > { %2092 = shalt.err (!%p2089_p9)
}
  0x53   : > { %s2093_s30 = scalar_lea.vmem %s2364_s10, 128  ;;  %s2184_s15 = smov [#allocation2]  }
  0x54   : > { %p2094_p12 = scmp.ne.s32.totalorder %s2364_s10, %s2093_s30  ;;  %s2098_s16 = sshll.u32 %s2184_s15, 4  ;;  %s2099_s16 = int_to_ptr.vmem [resolvable:$false] %s2098_s16 }
  0x55   : > { %s2100_s9 = scalar_lea.vmem %s2099_s16, 256  ;;  %p2101_p4 = scmp.lt.s32.totalorder %s2364_s10, %s2099_s16 }
  0x56   : > { %p2096_p2 = pnand %p2094_p12, %p2080_p0  ;;  %p2102_p13 = scmp.lt.s32.totalorder %s2100_s9, %s2093_s30 }
  0x58   : > { %p2097_p5 = pneg %p2096_p2  ;;  %p2103_p6 = por %p2102_p13, %p2101_p4 }
  0x5a   : > { %p2104_p10 = pnand %p2103_p6, %p2097_p5 }
  0x5c   : > { %2107 = shalt.err (!%p2104_p10)
}
  0x5d   : > { %1946 = dma.hbm_to_vmem [thread:$0]  (!%p2366_p11), %s2362_s8, 128, %s2364_s10, %s209_s28  }
  0x5e   : > { %228 = sbr.rel (%p2269_p8) target bundleno = 1716 (0x6b4), region = 40  ;;  %s2398_s12 = sand.u32 (!%p2269_p8), 1, %s2170_s19  }
  0x5f   : > { %s1792_s13 = sshll.u32 (!%p2269_p8), %s2398_s12, 3  ;;  %s231_s29 = scalar_lea.sflag (!%p2269_p8), [#allocation3], %s2398_s12 }
  0x60   : > { %s234_s17 = scalar_lea.vmem (!%p2269_p8), [#allocation2], %s1792_s13  ;;  %p2655_p4 = scmp.ne.s32.totalorder (!%p2269_p8), %s2648_s24, 0 }
  0x65   : > { %2153 = dma.done.wait (%p2655_p4), %s231_s29, 128  }
  0x66   : > { %2155 = vsyncadd (%p2655_p4), %s231_s29, 4294967168  ;;  %p2656_p5 = scmp.eq.s32.totalorder %s2250_s22, 0 }
  0x68   : > { %2157 = dma.done.wait (%p2656_p5), [#allocation6], 1024   ;;  %p2657_p8 = pmov %p2656_p5 }
  0x69   : > { %v2185_v0 = vmov 0.0|0.0   ;;  %vm2186_vm0 = vmmov 0   ;;  %v2187_v1 = vmov 0.0   ;;  %v270_v2 = vld [vmem:[#allocation5] sm:$0xff]  ;;  %v271_v3 = vld [vmem:[#allocation5 + $0x8] sm:$0xff]  ;;  %v272_v4 = vld [vmem:[#allocation5 + $0x10] sm:$0xff]  ;;  %v370_v18 = vlaneseq }
  0x6a   : > { %2159 = vsyncadd (%p2657_p8), [#allocation6], 4294966272  ;;  %1912 = vmatprep.subr.bf16.mxu0 %v2185_v0  ;;  %1858 = vmatprep.mubr.msk.f32.mxu0 %vm2186_vm0, %v2187_v1  ;;  %v1913_v5 = vpack.c.bf16 %v271_v3, %v270_v2  ;;  %v273_v6 = vld [vmem:[#allocation5 + $0x18] sm:$0xff]  ;;  %vm281_vm1 = vcmask 261120   ;;  %v1796_v9 = vld [vmem:[%s2641_s2] ss:$0 sm:$0xff] }
  0x6b   : > { %1861 = vmatprep.subr.mxu1 %v2187_v1  ;;  %1863 = vmatprep.mubr.msk.f32.mxu1 %vm2186_vm0, %v2187_v1  ;;  %v1916_v7 = vpack.c.bf16 %v273_v6, %v272_v4  ;;  %v2419_v8 = vld [vmem:[%s234_s17] sm:$0xff]  ;;  %s2188_s8 = smov 104   ;;  %s2189_s10 = smov 120   ;;  %v2192_v16 = vmov 1983009808   ;;  %v371_v20 = vshrl.u32 %v370_v18, 7 }
  0x6c   : > { %1914 = vmatpush3.bf16.msra.mxu0 %v1913_v5  ;;  %s2190_s11 = smov 96   ;;  %s2191_s28 = smov 112   ;;  %v368_v17 = vunpack.c.l.s4 %v2192_v16  ;;  %v2193_v21 = vmov 1934713408   ;;  %vm801_vm2 = vcmask 64512   ;;  %vm1591_vm3 = vcmask 130048  }
  0x6d   : > { %1915 = vmatprep.subr.bf16.mxu0 %v2185_v0  ;;  %v400_v22 = vunpack.c.l.s4 %v2193_v21  ;;  %s2194_s7 = smov 64   ;;  %s2195_s6 = smov 16   ;;  %vm1593_vm4 = vcmask 195584  }
  0x6e   : > { %v369_v19 = vunpack.c.0.s8 %v368_v17  ;;  %s2196_s30 = smov 8   ;;  %s2197_s15 = smov 24  }
  0x6f   : > { %v401_v28 = vunpack.c.0.s8 %v400_v22  ;;  %s1821_s29 = sshll.u32 %s2250_s22, 7  ;;  %s268_s17 = scalar_lea.vmem [#allocation8], %s1792_s13 }
  0x70   : > { %1917 = vmatpush3.bf16.msra.mxu0 %v1916_v7  ;;  %v2448_v25 = vsub.s32 %v369_v19, %v371_v20  ;;  %s1695_s24 = sshll.u32 %s268_s17, 4  ;;  %s1682_s22 = scalar_lea.sflag [#allocation4], %s2398_s12  ;;  %s2596_s24 = int_to_ptr.vmem [resolvable:$true] %s1695_s24 }
  0x71   : > { %1881 = vmatprep.subr.mxu0 %v2187_v1  ;;  %v2458_v33 = vsub.s32 %v401_v28, %v371_v20  ;;  %p2658_p0 = scmp.ne.s32.totalorder %s2653_s23, 0  ;;  %s2198_s13 = smov [#allocation8]  }
  0x73   : > { %1859 = vmatmul.mubr.msk.f32.vlgmr.msra.gmra.mrb[0].mxu0 %vm281_vm1, %v2419_v8 }
  0x74   : > { %1883 = vmatprep.mubr.msk.f32.mxu0 %vm2186_vm0, %v2187_v1 }
 0x146   : > { %v351_v10 = vpop.f32.mrb[0].mxu0 }
 0x147   : > { %v2429_v11 = vadd.f32 %v1796_v9, %v351_v10  ;;  %v1860_v12 = vpop.f32.mrb[1].mxu0 }
 0x149   : > { %362 = vrot.lane.b32.xlu1 %v2429_v11, %s2188_s8  ;;  %356 = vrot.lane.b32.xlu0 %v2429_v11, %s2189_s10  ;;  %s2594_s10 = scalar_lea.hbm %s2644_s5, %s1821_s29 }
 0x14d   : > { %505 = vrot.lane.b32.xlu1 %v2429_v11, %s2190_s11  ;;  %359 = vrot.lane.b32.xlu0 %v2429_v11, %s2191_s28  ;;  %s2112_s28 = sshll.u32 %s2198_s13, 4  ;;  %s2113_s28 = int_to_ptr.vmem [resolvable:$false] %s2112_s28 }
 0x14e   : > { %p2115_p7 = scmp.lt.s32.totalorder %s2596_s24, %s2113_s28 }
 0x1bb   : > { %v2435_v13 = vpop.permute.xlu0 %356  ;;  %v2438_v14 = vpop.permute.xlu1 %362 }
 0x1bc   : > { %507 = vrot.lane.b32.xlu0 %v2435_v13, %s2190_s11  ;;  %v381_v26 = vcombine.low %v2435_v13, %v2438_v14  ;;  %v382_v27 = vcombine.high %v2435_v13, %v2438_v14 }
 0x1be   : > { %v389_v31 = vrot.slane %v381_v26, %v2448_v25  ;;  %v396_v32 = vrot.slane %v382_v27, %v2448_v25 }
 0x1bf   : > { %v2440_v15 = vpop.permute.xlu0 %359  ;;  %v506_v38 = vpop.permute.xlu1 %505 }
 0x1c0   : > { %511 = vrot.lane.b32.xlu0 %v2438_v14, %s2190_s11  ;;  %509 = vrot.lane.b32.xlu1 %v2440_v15, %s2190_s11  ;;  %v365_v23 = vcombine.low %v2429_v11, %v2440_v15  ;;  %v366_v24 = vcombine.high %v2429_v11, %v2440_v15  ;;  %s2108_s11 = scalar_lea.vmem %s2596_s24, 128 }
 0x1c1   : > { %p2109_p11 = scmp.ne.s32.totalorder %s2596_s24, %s2108_s11 }
 0x1c2   : > { %v373_v29 = vrot.slane %v365_v23, %v2448_v25  ;;  %v380_v30 = vrot.slane %v366_v24, %v2448_v25 }
 0x1c3   : > { %p2110_p1 = pnand %p2109_p11, %p2658_p0 }
 0x1c4   : > { %v397_v34 = vcombine.low %v373_v29, %v389_v31  ;;  %v398_v35 = vcombine.high %v373_v29, %v389_v31  ;;  %v413_v36 = vcombine.low %v380_v30, %v396_v32  ;;  %v414_v37 = vcombine.high %v380_v30, %v396_v32 }
 0x1c5   : > { %p2111_p3 = pneg %p2110_p1 }
 0x1c6   : > { %v405_v39 = vrot.slane %v397_v34, %v2458_v33  ;;  %v412_v40 = vrot.slane %v398_v35, %v2458_v33  ;;  %v421_v41 = vrot.slane %v413_v36, %v2458_v33  ;;  %v428_v42 = vrot.slane %v414_v37, %v2458_v33 }
 0x1c8   : > { %v433_v44 = vcombine.low %v405_v39, %v412_v40  ;;  %v1798_v45 = vcombine.high %v405_v39, %v412_v40  ;;  %v449_v46 = vcombine.low %v421_v41, %v428_v42  ;;  %v1799_v47 = vcombine.high %v421_v41, %v428_v42 }
 0x1ca   : > { %v440_v58 = vrot.slane %v433_v44, %v2448_v25  ;;  %v448_v59 = vrot.slane %v1798_v45, %v2448_v25  ;;  %v456_v60 = vrot.slane %v449_v46, %v2448_v25  ;;  %v464_v61 = vrot.slane %v1799_v47, %v2448_v25 }
 0x1cc   : > { %v465_v9 = vcombine.low %v440_v58, %v448_v59  ;;  %v481_v10 = vcombine.low %v456_v60, %v464_v61  ;;  %v466_v30 = vcombine.high %v440_v58, %v448_v59  ;;  %v482_v31 = vcombine.high %v456_v60, %v464_v61 }
 0x1ce   : > { %v473_v23 = vrot.slane %v465_v9, %v2458_v33  ;;  %v489_v24 = vrot.slane %v481_v10, %v2458_v33  ;;  %v480_v39 = vrot.slane %v466_v30, %v2458_v33  ;;  %v496_v40 = vrot.slane %v482_v31, %v2458_v33 }
 0x1d0   : > { %v497_v32 = vcombine.low %v473_v23, %v489_v24  ;;  %v498_v37 = vcombine.high %v473_v23, %v489_v24  ;;  %v499_v45 = vcombine.low %v480_v39, %v496_v40 }
 0x1d2   : > { %v502_v44 = vmul.f32 0.35355338, %v498_v37  ;;  %v503_v47 = vmul.f32 0.35355338, %v499_v45 }
 0x22e   : > { %v508_v43 = vpop.permute.xlu0 %507 }
 0x232   : > { %v510_v48 = vpop.permute.xlu1 %509  ;;  %v512_v49 = vpop.permute.xlu0 %511 }
 0x233   : > { %v517_v50 = vcombine.low %v506_v38, %v510_v48  ;;  %v518_v51 = vcombine.high %v506_v38, %v510_v48  ;;  %v533_v52 = vcombine.low %v508_v43, %v512_v49  ;;  %v534_v53 = vcombine.high %v508_v43, %v512_v49 }
 0x234   : > { %v501_v38 = vmul.f32 0.35355338, %v497_v32  ;;  %v500_v48 = vcombine.high %v480_v39, %v496_v40 }
 0x235   : > { %v525_v54 = vrot.slane %v517_v50, %v2448_v25  ;;  %v532_v55 = vrot.slane %v518_v51, %v2448_v25  ;;  %v541_v56 = vrot.slane %v533_v52, %v2448_v25  ;;  %v548_v57 = vrot.slane %v534_v53, %v2448_v25 }
 0x236   : > { %v504_v50 = vmul.f32 0.35355338, %v500_v48 }
 0x237   : > { %v549_v62 = vcombine.low %v525_v54, %v541_v56  ;;  %v550_v63 = vcombine.high %v525_v54, %v541_v56  ;;  %v565_v2 = vcombine.low %v532_v55, %v548_v57  ;;  %v566_v3 = vcombine.high %v532_v55, %v548_v57 }
 0x239   : > { %v557_v4 = vrot.slane %v549_v62, %v2458_v33  ;;  %v564_v5 = vrot.slane %v550_v63, %v2458_v33  ;;  %v573_v6 = vrot.slane %v565_v2, %v2458_v33  ;;  %v580_v7 = vrot.slane %v566_v3, %v2458_v33 }
 0x23b   : > { %v585_v12 = vcombine.low %v557_v4, %v564_v5  ;;  %v1800_v16 = vcombine.high %v557_v4, %v564_v5  ;;  %v601_v17 = vcombine.low %v573_v6, %v580_v7  ;;  %v1801_v18 = vcombine.high %v573_v6, %v580_v7 }
 0x23d   : > { %v592_v19 = vrot.slane %v585_v12, %v2448_v25  ;;  %v600_v20 = vrot.slane %v1800_v16, %v2448_v25  ;;  %v608_v21 = vrot.slane %v601_v17, %v2448_v25  ;;  %v616_v22 = vrot.slane %v1801_v18, %v2448_v25 }
 0x23f   : > { %v617_v26 = vcombine.low %v592_v19, %v600_v20  ;;  %v633_v27 = vcombine.low %v608_v21, %v616_v22  ;;  %v618_v34 = vcombine.high %v592_v19, %v600_v20  ;;  %v634_v35 = vcombine.high %v608_v21, %v616_v22 }
 0x241   : > { %v625_v28 = vrot.slane %v617_v26, %v2458_v33  ;;  %v641_v29 = vrot.slane %v633_v27, %v2458_v33  ;;  %v632_v42 = vrot.slane %v618_v34, %v2458_v33  ;;  %v648_v43 = vrot.slane %v634_v35, %v2458_v33 }
 0x243   : > { %v649_v36 = vcombine.low %v625_v28, %v641_v29  ;;  %v650_v41 = vcombine.high %v625_v28, %v641_v29  ;;  %v651_v46 = vcombine.low %v632_v42, %v648_v43  ;;  %v652_v49 = vcombine.high %v632_v42, %v648_v43 }
 0x245   : > { %1862 = vmatpush3.xpose.msk.msra.mxu1 %vm801_vm2, %v649_v36 }
 0x246   : > { %1866 = vmatprep.subr.mxu1 %v2187_v1 }
 0x248   : > { %1864 = vmatmul.mubr.msk.f32.vlgmr.msra.gmra.mrb[0].mxu1 %vm801_vm2, %v501_v38 }
 0x249   : > { %1867 = vmatpush3.xpose.msk.msra.mxu1 %vm801_vm2, %v650_v41  ;;  %1868 = vmatprep.mubr.msk.f32.mxu1 %vm2186_vm0, %v2187_v1 }
 0x24a   : > { %1871 = vmatprep.subr.mxu1 %v2187_v1 }
 0x24c   : > { %1869 = vmatmul.mubr.msk.f32.vlgmr.msra.gmra.mrb[2].mxu1 %vm801_vm2, %v502_v44 }
 0x24d   : > { %1872 = vmatpush3.xpose.msk.msra.mxu1 %vm801_vm2, %v651_v46  ;;  %1873 = vmatprep.mubr.msk.f32.mxu1 %vm2186_vm0, %v2187_v1 }
 0x24e   : > { %1876 = vmatprep.subr.mxu1 %v2187_v1 }
 0x250   : > { %1874 = vmatmul.mubr.msk.f32.vlgmr.msra.gmra.mrb[4].mxu1 %vm801_vm2, %v503_v47 }
 0x251   : > { %1877 = vmatpush3.xpose.msk.msra.mxu1 %vm801_vm2, %v652_v49  ;;  %1878 = vmatprep.mubr.msk.f32.mxu1 %vm2186_vm0, %v2187_v1 }
 0x252   : > { %1886 = vmatprep.subr.mxu1 %v2187_v1 }
 0x254   : > { %1879 = vmatmul.mubr.msk.f32.vlgmr.msra.gmra.mrb[6].mxu1 %vm801_vm2, %v504_v50 }
 0x255   : > { %1888 = vmatprep.mubr.msk.f32.mxu1 %vm2186_vm0, %v2187_v1 }
 0x31b   : > { %v874_v51 = vpop.f32.mrb[0].mxu1 }
 0x31c   : > { %v1865_v52 = vpop.f32.mrb[1].mxu1  ;;  %v1106_v53 = vsel %vm801_vm2, %v874_v51, -inf }
 0x31d   : > { %1107 = vmax.xlane.f32.xlu1 %v1106_v53 }
 0x31f   : > { %v950_v54 = vpop.f32.mrb[2].mxu1 }
 0x320   : > { %v1870_v55 = vpop.f32.mrb[3].mxu1  ;;  %v1109_v56 = vsel %vm801_vm2, %v950_v54, -inf }
 0x321   : > { %1110 = vmax.xlane.f32.xlu0 %v1109_v56 }
 0x323   : > { %v1026_v57 = vpop.f32.mrb[4].mxu1 }
 0x324   : > { %v1875_v58 = vpop.f32.mrb[5].mxu1  ;;  %v1112_v59 = vsel %vm801_vm2, %v1026_v57, -inf }
 0x325   : > { %1113 = vmax.xlane.f32.xlu0 %v1112_v59 }
 0x327   : > { %v1102_v60 = vpop.f32.mrb[6].mxu1 }
 0x328   : > { %v1880_v61 = vpop.f32.mrb[7].mxu1  ;;  %v1115_v62 = vsel %vm801_vm2, %v1102_v60, -inf }
 0x329   : > { %1116 = vmax.xlane.f32.xlu1 %v1115_v62 }
 0x33a   : > { %655 = vrot.lane.b32.xlu1 %v2435_v13, %s2194_s7 }
 0x33b   : > { %653 = vrot.lane.b32.xlu0 %v2429_v11, %s2194_s7 }
 0x3aa   : > { %v1108_v63 = vpop.xlane.xlu1 %1107 }
 0x3ab   : > { %v1118_v2 = vsub.f32 %v874_v51, %v1108_v63 }
 0x3ad   : > { %v1122_v3 = vmul.f32 1.442695, %v1118_v2 }
 0x3ae   : > { %v1111_v4 = vpop.xlane.xlu0 %1110 }
 0x3af   : > { %2006 = vpow2.f32 %v1122_v3  ;;  %v1119_v5 = vsub.f32 %v950_v54, %v1111_v4 }
 0x3b1   : > { %v1124_v6 = vmul.f32 1.442695, %v1119_v5 }
 0x3b2   : > { %v1114_v7 = vpop.xlane.xlu0 %1113 }
 0x3b3   : > { %2008 = vpow2.f32 %v1124_v6  ;;  %v1120_v9 = vsub.f32 %v1026_v57, %v1114_v7 }
 0x3b5   : > { %v1126_v10 = vmul.f32 1.442695, %v1120_v9 }
 0x3b6   : > { %v1117_v12 = vpop.xlane.xlu1 %1116  ;;  %v654_v24 = vpop.permute.xlu0 %653 }
 0x3b7   : > { %2010 = vpow2.f32 %v1126_v10  ;;  %v1121_v16 = vsub.f32 %v1102_v60, %v1117_v12 }
 0x3b9   : > { %v2516_v17 = vpop.eup %2006  ;;  %v1128_v13 = vmul.f32 1.442695, %v1121_v16 }
 0x3ba   : > { %v1130_v11 = vsel %vm801_vm2, %v2516_v17, 0.0  ;;  %v656_v26 = vpop.permute.xlu1 %655 }
 0x3bb   : > { %2012 = vpow2.f32 %v1128_v13  ;;  %1131 = vadd.xlane.f32.xlu0 %v1130_v11 }
 0x3bd   : > { %v2009_v18 = vpop.eup %2008 }
 0x3be   : > { %v1133_v19 = vsel %vm801_vm2, %v2009_v18, 0.0 }
 0x3bf   : > { %1134 = vadd.xlane.f32.xlu1 %v1133_v19 }
 0x3c1   : > { %v2521_v20 = vpop.eup %2010 }
 0x3c2   : > { %v1136_v21 = vsel %vm801_vm2, %v2521_v20, 0.0 }
 0x3c3   : > { %1137 = vadd.xlane.f32.xlu0 %v1136_v21 }
 0x3c5   : > { %v2525_v22 = vpop.eup %2012 }
 0x3c6   : > { %v1139_v23 = vsel %vm801_vm2, %v2525_v22, 0.0 }
 0x3c7   : > { %1140 = vadd.xlane.f32.xlu1 %v1139_v23 }
 0x3d8   : > { %657 = vrot.lane.b32.xlu1 %v2440_v15, %s2194_s7 }
 0x3d9   : > { %659 = vrot.lane.b32.xlu0 %v2438_v14, %s2194_s7  ;;  %s2114_s7 = scalar_lea.vmem %s2113_s28, 256 }
 0x3da   : > { %p2116_p9 = scmp.lt.s32.totalorder %s2114_s7, %s2108_s11 }
 0x3dc   : > { %p2117_p12 = por %p2116_p9, %p2115_p7 }
 0x3de   : > { %p2118_p2 = pnand %p2117_p12, %p2111_p3 }
 0x448   : > { %v1132_v27 = vpop.xlane.xlu0 %1131 }
 0x449   : > { %2014 = vrcp.f32 %v1132_v27 }
 0x44c   : > { %v1135_v28 = vpop.xlane.xlu1 %1134 }
 0x44d   : > { %2016 = vrcp.f32 %v1135_v28 }
 0x450   : > { %v1138_v29 = vpop.xlane.xlu0 %1137 }
 0x451   : > { %2018 = vrcp.f32 %v1138_v29 }
 0x453   : > { %v2015_v56 = vpop.eup %2014 }
 0x454   : > { %v660_v30 = vpop.permute.xlu0 %659  ;;  %v1141_v31 = vpop.xlane.xlu1 %1140  ;;  %v1146_v9 = vmul.f32 %v2015_v56, %v2516_v17  ;;  %v1595_v17 = vld [vmem:[#allocation7] sm:$0xff] }
 0x455   : > { %v681_v32 = vcombine.low %v656_v26, %v660_v30  ;;  %v682_v34 = vcombine.high %v656_v26, %v660_v30  ;;  %2020 = vrcp.f32 %v1141_v31 }
 0x457   : > { %v689_v38 = vrot.slane %v681_v32, %v2448_v25  ;;  %v696_v15 = vrot.slane %v682_v34, %v2448_v25  ;;  %v2017_v61 = vpop.eup %2016 }
 0x458   : > { %v658_v35 = vpop.permute.xlu1 %657  ;;  %v1147_v10 = vmul.f32 %v2017_v61, %v2009_v18  ;;  %v1596_v18 = vld [vmem:[#allocation7 + $0x8] sm:$0xff] }
 0x459   : > { %v665_v36 = vcombine.low %v654_v24, %v658_v35  ;;  %v666_v37 = vcombine.high %v654_v24, %v658_v35  ;;  %v1919_v19 = vpack.c.bf16 %v1596_v18, %v1595_v17 }
 0x45b   : > { %v673_v39 = vrot.slane %v665_v36, %v2448_v25  ;;  %v680_v14 = vrot.slane %v666_v37, %v2448_v25  ;;  %v2019_v2 = vpop.eup %2018 }
 0x45c   : > { %v1148_v13 = vmul.f32 %v2019_v2, %v2521_v20 }
 0x45d   : > { %v697_v40 = vcombine.low %v673_v39, %v689_v38  ;;  %v698_v41 = vcombine.high %v673_v39, %v689_v38  ;;  %v713_v42 = vcombine.low %v680_v14, %v696_v15  ;;  %v714_v43 = vcombine.high %v680_v14, %v696_v15  ;;  %v1597_v39 = vld [vmem:[#allocation7 + $0x10] sm:$0xff]  ;;  %v1598_v14 = vld [vmem:[#allocation7 + $0x18] sm:$0xff] }
 0x45f   : > { %v705_v44 = vrot.slane %v697_v40, %v2458_v33  ;;  %v712_v45 = vrot.slane %v698_v41, %v2458_v33  ;;  %v721_v46 = vrot.slane %v713_v42, %v2458_v33  ;;  %v728_v47 = vrot.slane %v714_v43, %v2458_v33  ;;  %v2021_v7 = vpop.eup %2020 }
 0x460   : > { %v1149_v11 = vmul.f32 %v2021_v7, %v2525_v22  ;;  %v1818_v7 = vld [vmem:[%s2643_s4] ss:$0 sm:$0xff] }
 0x461   : > { %v733_v48 = vcombine.low %v705_v44, %v712_v45  ;;  %v1802_v49 = vcombine.high %v705_v44, %v712_v45  ;;  %v749_v50 = vcombine.low %v721_v46, %v728_v47  ;;  %v1803_v51 = vcombine.high %v721_v46, %v728_v47 }
 0x462   : > { %v1922_v44 = vpack.c.bf16 %v1598_v14, %v1597_v39 }
 0x463   : > { %v740_v52 = vrot.slane %v733_v48, %v2448_v25  ;;  %v748_v53 = vrot.slane %v1802_v49, %v2448_v25  ;;  %v756_v54 = vrot.slane %v749_v50, %v2448_v25  ;;  %v764_v55 = vrot.slane %v1803_v51, %v2448_v25 }
 0x465   : > { %v765_v57 = vcombine.low %v740_v52, %v748_v53  ;;  %v781_v58 = vcombine.low %v756_v54, %v764_v55  ;;  %v766_v59 = vcombine.high %v740_v52, %v748_v53  ;;  %v782_v60 = vcombine.high %v756_v54, %v764_v55 }
 0x467   : > { %v773_v62 = vrot.slane %v765_v57, %v2458_v33  ;;  %v789_v63 = vrot.slane %v781_v58, %v2458_v33  ;;  %v780_v3 = vrot.slane %v766_v59, %v2458_v33  ;;  %v796_v4 = vrot.slane %v782_v60, %v2458_v33 }
 0x469   : > { %v797_v5 = vcombine.low %v773_v62, %v789_v63  ;;  %v798_v6 = vcombine.high %v773_v62, %v789_v63  ;;  %v799_v12 = vcombine.low %v780_v3, %v796_v4  ;;  %v800_v16 = vcombine.high %v780_v3, %v796_v4 }
 0x46b   : > { %1882 = vmatpush3.msra.mxu0 %v797_v5  ;;  %1887 = vmatpush3.msra.mxu1 %v798_v6 }
 0x46c   : > { %1884 = vmatmul.mubr.msk.f32.vlgmr.msra.gmra.mrb[2].mxu0 %vm801_vm2, %v1146_v9  ;;  %1889 = vmatmul.mubr.msk.f32.vlgmr.msra.gmra.mrb[8].mxu1 %vm801_vm2, %v1147_v10 }
 0x46d   : > { %1891 = vmatprep.subr.mxu0 %v2187_v1  ;;  %1896 = vmatprep.subr.mxu1 %v2187_v1 }
 0x46e   : > { %1892 = vmatpush3.msra.mxu0 %v799_v12  ;;  %1897 = vmatpush3.msra.mxu1 %v800_v16 }
 0x46f   : > { %1893 = vmatprep.mubr.msk.f32.mxu0 %vm2186_vm0, %v2187_v1  ;;  %1898 = vmatprep.mubr.msk.f32.mxu1 %vm2186_vm0, %v2187_v1 }
 0x470   : > { %1894 = vmatmul.mubr.msk.f32.vlgmr.msra.gmra.mrb[4].mxu0 %vm801_vm2, %v1148_v13  ;;  %1899 = vmatmul.mubr.msk.f32.vlgmr.msra.gmra.mrb[10].mxu1 %vm801_vm2, %v1149_v11 }
 0x471   : > { %1918 = vmatprep.subr.bf16.mxu0 %v2185_v0  ;;  %1909 = vmatprep.mubr.msk.f32.mxu0 %vm2186_vm0, %v2187_v1 }
 0x472   : > { %1920 = vmatpush3.bf16.msra.mxu0 %v1919_v19 }
 0x473   : > { %1921 = vmatprep.subr.bf16.mxu0 %v2185_v0 }
 0x476   : > { %1923 = vmatpush3.bf16.msra.mxu0 %v1922_v44 }
 0x53f   : > { %v1219_v20 = vpop.f32.mrb[2].mxu0  ;;  %v1292_v21 = vpop.f32.mrb[8].mxu1 }
 0x540   : > { %v1885_v22 = vpop.f32.mrb[3].mxu0  ;;  %v1890_v23 = vpop.f32.mrb[9].mxu1 }
 0x543   : > { %v1365_v24 = vpop.f32.mrb[4].mxu0  ;;  %v1438_v26 = vpop.f32.mrb[10].mxu1 }
 0x544   : > { %v1442_v27 = vcombine.low %v1219_v20, %v1365_v24  ;;  %v1443_v28 = vcombine.high %v1219_v20, %v1365_v24  ;;  %v1458_v29 = vcombine.low %v1292_v21, %v1438_v26  ;;  %v1459_v30 = vcombine.high %v1292_v21, %v1438_v26  ;;  %v1895_v31 = vpop.f32.mrb[5].mxu0  ;;  %v1900_v32 = vpop.f32.mrb[11].mxu1 }
 0x546   : > { %v1450_v1 = vrot.slane %v1442_v27, %v2448_v25  ;;  %v1457_v34 = vrot.slane %v1443_v28, %v2448_v25  ;;  %v1466_v35 = vrot.slane %v1458_v29, %v2448_v25  ;;  %v1473_v0 = vrot.slane %v1459_v30, %v2448_v25 }
 0x548   : > { %v1474_v36 = vcombine.low %v1450_v1, %v1466_v35  ;;  %v1475_v37 = vcombine.high %v1450_v1, %v1466_v35  ;;  %v1490_v38 = vcombine.low %v1457_v34, %v1473_v0  ;;  %v1491_v15 = vcombine.high %v1457_v34, %v1473_v0 }
 0x54a   : > { %v1482_v40 = vrot.slane %v1474_v36, %v2458_v33  ;;  %v1489_v41 = vrot.slane %v1475_v37, %v2458_v33  ;;  %v1498_v42 = vrot.slane %v1490_v38, %v2458_v33  ;;  %v1505_v43 = vrot.slane %v1491_v15, %v2458_v33 }
 0x54c   : > { %v1510_v45 = vcombine.low %v1482_v40, %v1489_v41  ;;  %v1816_v46 = vcombine.high %v1482_v40, %v1489_v41  ;;  %v1526_v47 = vcombine.low %v1498_v42, %v1505_v43  ;;  %v1817_v48 = vcombine.high %v1498_v42, %v1505_v43 }
 0x54e   : > { %v1517_v49 = vrot.slane %v1510_v45, %v2448_v25  ;;  %v1525_v50 = vrot.slane %v1816_v46, %v2448_v25  ;;  %v1533_v51 = vrot.slane %v1526_v47, %v2448_v25  ;;  %v1541_v52 = vrot.slane %v1817_v48, %v2448_v25 }
 0x550   : > { %v1543_v53 = vcombine.high %v1517_v49, %v1525_v50  ;;  %v1559_v54 = vcombine.high %v1533_v51, %v1541_v52  ;;  %v1542_v55 = vcombine.low %v1517_v49, %v1525_v50  ;;  %v1558_v56 = vcombine.low %v1533_v51, %v1541_v52 }
 0x552   : > { %v1557_v57 = vrot.slane %v1543_v53, %v2458_v33  ;;  %v1573_v58 = vrot.slane %v1559_v54, %v2458_v33  ;;  %v1550_v59 = vrot.slane %v1542_v55, %v2458_v33  ;;  %v1566_v60 = vrot.slane %v1558_v56, %v2458_v33 }
 0x554   : > { %v1576_v61 = vcombine.low %v1557_v57, %v1573_v58  ;;  %v1575_v62 = vcombine.high %v1550_v59, %v1566_v60  ;;  %v1577_v63 = vcombine.high %v1557_v57, %v1573_v58  ;;  %v1574_v2 = vcombine.low %v1550_v59, %v1566_v60 }
 0x556   : > { %1583 = vrot.lane.b32.xlu0 %v1576_v61, %s2195_s6  ;;  %1579 = vrot.lane.b32.xlu1 %v1575_v62, %s2196_s30 }
 0x55a   : > { %1587 = vrot.lane.b32.xlu1 %v1577_v63, %s2197_s15 }
 0x5c8   : > { %v1580_v25 = vpop.permute.xlu1 %1579  ;;  %v1584_v3 = vpop.permute.xlu0 %1583 }
 0x5c9   : > { %v1590_v4 = vsel %vm801_vm2, %v1574_v2, %v1580_v25 }
 0x5ca   : > { %v1592_v5 = vsel %vm1591_vm3, %v1590_v4, %v1584_v3 }
 0x5cc   : > { %v1588_v33 = vpop.permute.xlu1 %1587 }
 0x5cd   : > { %v1594_v6 = vsel %vm1593_vm4, %v1592_v5, %v1588_v33 }
 0x5ce   : > { %1910 = vmatmul.mubr.msk.f32.vlgmr.msra.gmra.mrb[6].mxu0 %vm281_vm1, %v1594_v6 }
 0x6a1   : > { %v1675_v9 = vpop.f32.mrb[6].mxu0 }
 0x6a2   : > { %v1676_v10 = vadd.f32 %v1818_v7, %v1675_v9  ;;  %v1911_v12 = vpop.f32.mrb[7].mxu0 }
 0x6a4   : > { %v1679_v16 = vadd.f32 %v1676_v10, %v2419_v8 }
 0x6a6   : > { %1680 = vst.msk [vmem:[%s268_s17] sm:$0xff] %vm281_vm1, %v1679_v16 }
 0x6a7   : > { %2121 = shalt.err (!%p2118_p2)
}
 0x6a8   : > { %s2122_s12 = scalar_lea.hbm %s2594_s10, 128  ;;  %s2126_s15 = scalar_lea.hbm %s2644_s5, 256 }
 0x6a9   : > { %p2123_p13 = scmp.ne.s32.totalorder %s2594_s10, %s2122_s12  ;;  %p2127_p4 = scmp.lt.u32.totalorder %s2594_s10, %s2644_s5 }
 0x6aa   : > { %p2128_p5 = scmp.lt.u32.totalorder %s2126_s15, %s2122_s12  ;;  %p2130_p11 = scmp.lt.u32.totalorder %s2122_s12, %s2594_s10 }
 0x6ab   : > { %p2124_p6 = pnand %p2123_p13, %p2658_p0 }
 0x6ac   : > { %p2129_p8 = por %p2128_p5, %p2127_p4 }
 0x6ad   : > { %p2125_p10 = pneg %p2124_p6 }
 0x6ae   : > { %p2131_p1 = por %p2130_p11, %p2129_p8 }
 0x6b0   : > { %p2132_p3 = pnand %p2131_p1, %p2125_p10 }
 0x6b2   : > { %2135 = shalt.err (!%p2132_p3)
}
 0x6b3   : > { %1934 = dma.vmem_to_hbm [thread:$0]  (%p2658_p0), %s2596_s24, 128, %s2594_s10, %s1682_s22  }
 0x6b4 PF: > { %s1707_s29 = sand.u32 1, %s2166_s18   ;;  %p2659_p7 = scmp.ne.s32.totalorder %s2649_s25, 0 }
 0x6b5   : > { %p2660_p9 = scmp.ge.s32.totalorder %s2178_s21, 2  ;;  %s1708_s17 = scalar_lea.sflag [#allocation4], %s1707_s29 }
 0x6b7   : > { %p1948_p12 = pnand %p2660_p9, %p2659_p7 }
 0x6b9   : > { %2161 = dma.done.wait (!%p1948_p12), %s1708_s17, 128  }
 0x6ba   : > { %2163 = vsyncadd (!%p1948_p12), %s1708_s17, 4294967168  ;;  %p19_p2 = scmp.ge.s32.totalorder %s2339_s14, 4   ;;  %s2661_s18 = smov %s2170_s19 }
 0x6bb   : > { %s2662_s19 = smov %s2174_s20  ;;  %s2663_s20 = smov %s2355_s27 }
 0x6bc   : > { %s2664_s21 = smov %s2339_s14  ;;  %21 = sbr.rel (!%p19_p2) target bundleno = 6 (0x6), region = 93 }
 0x6c3   :  { %1713 = vsyncpa [#allocation3], 1 }
 0x6c4   :  { %1715 = vsyncpa [#allocation3 + $0x1], 1 }
 0x6c5   :  { %1716 = vsyncpa [#allocation6], 1 }
 0x6c6   :  { %1717 = vsyncpa [#allocation4], 1 }
 0x6c7   :  { %1719 = vsyncpa [#allocation4 + $0x1], 1 }

</bundles_post_ra>
